<compile_context>
chip_gen: v7x
topology: tpu7x:2x2x1
jax: 0.10.0
libtpu: 0.0.40
codegen_flags: <defaults>
</compile_context>

<pallas_src>
import jax
import jax.numpy as jnp
from jax.experimental import pallas as pl
from jax.experimental.pallas import tpu as pltpu


# ------------------------------- kernels ----------------------------------- #

def _fused_kernel(x_ref, len_ref, tw_ref, o_ref):
    """Whole (b_tile, E, Tp) slab resident in VMEM: reduce + gate + scale."""
    b_tile, _, t_pad = x_ref.shape
    x = x_ref[...]                                        # (Bt, E, Tp), x dtype
    lengths = len_ref[...]                                # (Bt, 1, 1) int32

    # Per-row time mask (only (Bt, 1, Tp); broadcast over E inside the where).
    t_idx = jax.lax.broadcasted_iota(jnp.int32, (b_tile, 1, t_pad), 2)
    mask = t_idx < lengths                                # (Bt, 1, Tp)

    xf = x.astype(jnp.float32)
    s = jnp.sum(jnp.where(mask, xf, 0.0), axis=-1)        # (Bt, E) masked sum
    m = jnp.max(xf, axis=-1)                              # (Bt, E) unmasked max (PyTorch semantics)

    len_f = jnp.maximum(lengths[:, :, 0].astype(jnp.float32), 1.0)   # (Bt, 1), guard len==0
    y = s / len_f + m                                     # conv is linear+bias-free
    conv = jnp.dot(y, tw_ref[...], preferred_element_type=jnp.float32)
    gate = jax.nn.sigmoid(conv)                           # (Bt, E)

    # Multiply in x's dtype (bf16 stays bf16 -> half the VALU/vreg cost).
    o_ref[...] = (x * gate[:, :, None].astype(x.dtype)).astype(o_ref.dtype)


def _reduce_gate_kernel(minlen_ref, x_ref, len_ref, tw_ref, gate_ref,
                        sum_sc, max_sc):
    """Streaming reduction over T tiles; emits sigmoid gate on the last tile."""
    bi = pl.program_id(0)
    ti = pl.program_id(1)
    nt = pl.num_programs(1)
    b_tile, _, t_tile = x_ref.shape

    @pl.when(ti == 0)
    def _init():
        sum_sc[...] = jnp.zeros_like(sum_sc)
        max_sc[...] = jnp.full_like(max_sc, -jnp.inf)

    x = x_ref[...].astype(jnp.float32)                    # (Bt, E, Tt)
    lengths = len_ref[...]                                # (Bt, 1, 1) int32

    tile_end = (ti + 1) * t_tile
    min_len = minlen_ref[bi]                              # scalar (SMEM prefetch)

    # Fast path: tile fully inside every row's valid range -> no mask math.
    @pl.when(tile_end <= min_len)
    def _fast():
        sum_sc[...] += jnp.sum(x, axis=-1)

    # Slow path: only the straddling / trailing tiles pay iota+compare+select.
    @pl.when(tile_end > min_len)
    def _masked():
        t_idx = ti * t_tile + jax.lax.broadcasted_iota(
            jnp.int32, (b_tile, 1, t_tile), 2)
        mask = t_idx < lengths                            # (Bt, 1, Tt)
        sum_sc[...] += jnp.sum(jnp.where(mask, x, 0.0), axis=-1)

    # Max pool is intentionally unmasked (matches the PyTorch module).
    max_sc[...] = jnp.maximum(max_sc[...], jnp.max(x, axis=-1))

    @pl.when(ti == nt - 1)
    def _finalize():
        len_f = jnp.maximum(lengths[:, :, 0].astype(jnp.float32), 1.0)  # (Bt, 1)
        y = sum_sc[...] / len_f + max_sc[...]             # (Bt, E)
        conv = jnp.dot(y, tw_ref[...], preferred_element_type=jnp.float32)
        # Gate stored as (Bt, E, 1): E lands on sublanes like the x tiles, so
        # Pass 2's broadcast is a stride-0 lane splat (no relayout per step).
        gate_ref[...] = jax.nn.sigmoid(conv)[:, :, None]


def _scale_kernel(x_ref, gate_ref, o_ref):
    """Pure streaming multiply: out tile = x tile * gate block (lane splat)."""
    x = x_ref[...]                                        # (Bt, E, Tt)
    gate = gate_ref[...].astype(x.dtype)                  # (Bt, E, 1)
    o_ref[...] = (x * gate).astype(o_ref.dtype)


# ------------------------------- helpers ------------------------------------ #

def _vmem_capacity_bytes():
    try:
        cap = getattr(pltpu.get_tpu_info(), "vmem_capacity_bytes", None)
        if cap:
            return int(cap)
    except Exception:
        pass
    return 64 * 1024 * 1024   # conservative (v7x per-core VMEM)


def _divisors(n):
    return [d for d in range(1, n + 1) if n % d == 0]


def _pick_tile(n, base, cap):
    """Largest divisor of n that is a multiple of `base` and <= cap; else n."""
    best = None
    for cand in range(base, min(n, cap) + 1, base):
        if n % cand == 0:
            best = cand
    return best if best is not None else n


def _pad_value(dtype):
    dt = jnp.dtype(dtype)
    if jnp.issubdtype(dt, jnp.floating):
        return float(jnp.finfo(dt).min)
    return int(jnp.iinfo(dt).min)


def _toeplitz(w, e):
    """Banded matrix M so (y @ M) == PyTorch Conv1d(1,1,K,pad,bias=False) over channels."""
    # TODO(synk): for very large E, replace the dense ExE band matrix with K
    # shifted FMAs to avoid O(E^2) VMEM residency.
    k = w.shape[0]
    pad = (k - 1) // 2
    c_in = jnp.arange(e)[:, None]
    c_out = jnp.arange(e)[None, :]
    j = c_in - c_out + pad
    valid = (j >= 0) & (j < k)
    return jnp.where(valid, w[jnp.clip(j, 0, k - 1)], 0.0).astype(jnp.float32)


# ------------------------------- wrapper ------------------------------------ #

def channel_attention(x, length, w, *, b_tile=None, t_tile=None, fused=None):
    """x: (B, E, T) float; length: (B,) int; w: (K,) Conv1d weight (no bias)."""
    B, E, T = x.shape
    tw = _toeplitz(w, E)

    # Lane-dense T: pad up to a multiple of 128.  Pad value = dtype-min keeps
    # the unmasked max over the original T; the length mask keeps sums exact.
    t_pad = ((T + 127) // 128) * 128
    if t_pad != T:
        x_p = jnp.pad(x, ((0, 0), (0, 0), (0, t_pad - T)),
                      constant_values=_pad_value(x.dtype))
    else:
        x_p = x

    lengths = length.astype(jnp.int32)
    len3 = lengths.reshape(B, 1, 1)
    itemsize = jnp.dtype(x.dtype).itemsize

    # Generation-aware VMEM budget (v7x: 64 MiB, v5e/v6e: 128 MiB).
    cap = _vmem_capacity_bytes()
    vmem_limit = max(32 * 1024 * 1024, min(int(cap * 0.7), 100 * 1024 * 1024))

    # Batch tile: keep >= 2 batch blocks whenever B >= 2 so both v7x
    # TensorCores get work on the parallel axis; prefer 8-row tiles.
    if b_tile is None:
        if B == 1:
            b_tile = 1
        else:
            cands = [d for d in _divisors(B) if d <= max(1, B // 2)]
            small = [d for d in cands if d <= 8]
            b_tile = max(small if small else cands)
    assert B % b_tile == 0
    nb = B // b_tile

    # ---------- fused single-pass path (2x|x| HBM traffic) ----------------- #
    def _fused_need(bt):
        # in double-buffer + out double-buffer + ~2 f32 slab temps + Toeplitz.
        return bt * E * t_pad * (4 * itemsize + 8) + 4 * E * E + (1 << 16)

    slab_ok = _fused_need(b_tile) <= vmem_limit - 4 * 1024 * 1024
    use_fused = slab_ok if fused is None else (bool(fused) and slab_ok)

    if use_fused:
        out_p = pl.pallas_call(
            _fused_kernel,
            out_shape=jax.ShapeDtypeStruct((B, E, t_pad), x.dtype),
            grid=(nb,),
            in_specs=[
                pl.BlockSpec((b_tile, E, t_pad), lambda bi: (bi, 0, 0)),  # x slab
                pl.BlockSpec((b_tile, 1, 1), lambda bi: (bi, 0, 0)),      # lengths
                pl.BlockSpec((E, E), lambda bi: (0, 0)),                  # Toeplitz w
            ],
            out_specs=pl.BlockSpec((b_tile, E, t_pad), lambda bi: (bi, 0, 0)),
            compiler_params=pltpu.CompilerParams(
                dimension_semantics=("parallel",),
                vmem_limit_bytes=vmem_limit),
        )(x_p, len3, tw)
        return out_p if t_pad == T else out_p[:, :, :T]

    # ---------- two-pass streaming fallback -------------------------------- #
    if t_tile is None:
        blk_budget = min(8 * 1024 * 1024, vmem_limit // 6)
        cap_t = max(128, (blk_budget // (itemsize * b_tile * E)) // 128 * 128)
        t_tile = _pick_tile(t_pad, 128, cap_t)
    assert t_pad % t_tile == 0 and t_tile % 128 == 0
    nt = t_pad // t_tile

    # Per-batch-block min length for the mask-free fast path (scalar prefetch).
    min_lens = jnp.min(lengths.reshape(nb, b_tile), axis=1)

    # Pass 1: masked-avg + max reduction over T, gate emitted per (B_tile, E, 1).
    gate = pl.pallas_call(
        _reduce_gate_kernel,
        out_shape=jax.ShapeDtypeStruct((B, E, 1), jnp.float32),
        grid_spec=pltpu.PrefetchScalarGridSpec(
            num_scalar_prefetch=1,
            grid=(nb, nt),
            in_specs=[
                pl.BlockSpec((b_tile, E, t_tile), lambda bi, ti, mn: (bi, 0, ti)),
                pl.BlockSpec((b_tile, 1, 1), lambda bi, ti, mn: (bi, 0, 0)),
                pl.BlockSpec((E, E), lambda bi, ti, mn: (0, 0)),
            ],
            out_specs=pl.BlockSpec((b_tile, E, 1), lambda bi, ti, mn: (bi, 0, 0)),
            scratch_shapes=[
                pltpu.VMEM((b_tile, E), jnp.float32),   # masked sum accumulator
                pltpu.VMEM((b_tile, E), jnp.float32),   # max accumulator
            ]),
        compiler_params=pltpu.CompilerParams(
            dimension_semantics=("parallel", "arbitrary"),
            vmem_limit_bytes=vmem_limit),
    )(min_lens, x_p, len3, tw)

    # Pass 2: streaming scale of x by the gate.
    out_p = pl.pallas_call(
        _scale_kernel,
        out_shape=jax.ShapeDtypeStruct((B, E, t_pad), x.dtype),
        grid=(nb, nt),
        in_specs=[
            pl.BlockSpec((b_tile, E, t_tile), lambda bi, ti: (bi, 0, ti)),
            pl.BlockSpec((b_tile, E, 1), lambda bi, ti: (bi, 0, 0)),
        ],
        out_specs=pl.BlockSpec((b_tile, E, t_tile), lambda bi, ti: (bi, 0, ti)),
        compiler_params=pltpu.CompilerParams(
            dimension_semantics=("parallel", "parallel"),
            vmem_limit_bytes=vmem_limit),
    )(x_p, gate)

    return out_p if t_pad == T else out_p[:, :, :T]


# --------------------------- pure-JAX reference ----------------------------- #

def channel_attention_ref(x, length, w):
    """Mirrors the PyTorch forward (max over full T, avg over valid length)."""
    B, E, T = x.shape
    K = w.shape[0]
    pad = (K - 1) // 2
    mask = jnp.arange(T)[None, None, :] < length[:, None, None]
    len_f = jnp.maximum(length[:, None].astype(jnp.float32), 1.0)
    y_avg = jnp.sum(jnp.where(mask, x.astype(jnp.float32), 0.0), -1) / len_f
    y_max = jnp.max(x.astype(jnp.float32), -1)

    def conv1d(y):
        yp = jnp.pad(y, ((0, 0), (pad, pad)))
        return sum(w[j] * yp[:, j:j + E] for j in range(K))

    gate = jax.nn.sigmoid(conv1d(y_avg) + conv1d(y_max))
    return (x.astype(jnp.float32) * gate[:, :, None]).astype(x.dtype)


# ---------------------------------- test ------------------------------------ #

if __name__ == "__main__":
    key = jax.random.PRNGKey(0)
    k1, k2, k3 = jax.random.split(key, 3)

    B, E, T, K = 2, 16, 384, 5
    x = jax.random.normal(k1, (B, E, T), dtype=jnp.float32)
    length = jnp.array([T, 200], dtype=jnp.int32)           # per-batch valid lengths
    # Deterministic Conv1d(1, 1, K, bias=False) weight (PyTorch (1,1,K) -> (K,))
    w = jax.random.normal(k2, (K,), dtype=jnp.float32) * 0.1

    ref = channel_attention_ref(x, length, w)

    # 1) Fused single-pass path (slab fits VMEM; default).
    out = channel_attention(x, length, w)
    jax.block_until_ready(out)
    assert out.shape == (B, E, T)
    assert jnp.allclose(out, ref, atol=1e-5, rtol=1e-5), "mismatch (fused path)"

    # 2) Two-pass streaming fallback (forced), exercises cross-tile accumulation
    #    and the scalar-prefetch mask fast/slow paths.
    out2 = channel_attention(x, length, w, fused=False, t_tile=128)
    jax.block_until_ready(out2)
    assert jnp.allclose(out2, ref, atol=1e-5, rtol=1e-5), "mismatch (two-pass path)"

    # 3) T not a multiple of 128 -> exercises the lane-dense padding path.
    T3 = 200
    x3 = jax.random.normal(k3, (B, E, T3), dtype=jnp.float32)
    length3 = jnp.array([T3, 87], dtype=jnp.int32)
    ref3 = channel_attention_ref(x3, length3, w)
    out3 = channel_attention(x3, length3, w)
    jax.block_until_ready(out3)
    assert out3.shape == (B, E, T3)
    assert jnp.allclose(out3, ref3, atol=1e-5, rtol=1e-5), "mismatch (padded-T path)"

    print("KERNEL_OK")
</pallas_src>

<mosaic_0001>
module attributes {stable_mosaic.version = 11 : i64} {
  func.func @_fused_kernel(%arg0: i32, %arg1: memref<1x16x384xf32, #tpu.memory_space<vmem>>, %arg2: memref<1x1x1xi32, #tpu.memory_space<vmem>>, %arg3: memref<16x16xf32, #tpu.memory_space<vmem>>, %arg4: memref<1x16x384xf32, #tpu.memory_space<vmem>>) attributes {dimension_semantics = [#tpu.dimension_semantics<parallel>], iteration_bounds = array<i64: 2>, scalar_prefetch = 0 : i64, scratch_operands = 0 : i64, tpu.core_type = #tpu.core_type<tc>, window_params = [{transform_indices = @transform_0, window_bounds = array<i64: 1, 16, 384>}, {transform_indices = @transform_1, window_bounds = array<i64: 1, 1, 1>}, {pipeline_mode = #tpu.pipeline_mode<synchronous>, transform_indices = @transform_2, window_bounds = array<i64: 16, 16>}, {transform_indices = @transform_3, window_bounds = array<i64: 1, 16, 384>}]} {
    %c0 = arith.constant 0 : index
    %c0_0 = arith.constant 0 : index
    %c0_1 = arith.constant 0 : index
    %0 = vector.load %arg1[%c0, %c0_0, %c0_1] : memref<1x16x384xf32, #tpu.memory_space<vmem>>, vector<1x16x384xf32>
    %c0_2 = arith.constant 0 : index
    %c0_3 = arith.constant 0 : index
    %c0_4 = arith.constant 0 : index
    %1 = vector.load %arg2[%c0_2, %c0_3, %c0_4] : memref<1x1x1xi32, #tpu.memory_space<vmem>>, vector<1x1x1xi32>
    %2 = tpu.iota {dimensions = array<i32: 2>} : vector<1x1x384xi32>
    %3 = vector.broadcast %1 : vector<1x1x1xi32> to vector<1x1x384xi32>
    %4 = arith.cmpi slt, %2, %3 : vector<1x1x384xi32>
    %cst = arith.constant 0.000000e+00 : f32
    %5 = vector.shape_cast %4 : vector<1x1x384xi1> to vector<1x1x384xi1>
    %6 = vector.broadcast %5 : vector<1x1x384xi1> to vector<1x16x384xi1>
    %7 = vector.broadcast %cst : f32 to vector<1x16x384xf32>
    %8 = arith.select %6, %0, %7 : vector<1x16x384xi1>, vector<1x16x384xf32>
    %cst_5 = arith.constant dense<0.000000e+00> : vector<1x16xf32>
    %9 = vector.multi_reduction <add>, %8, %cst_5 [2] : vector<1x16x384xf32> to vector<1x16xf32>
    %cst_6 = arith.constant dense<0xFF800000> : vector<1x16xf32>
    %10 = vector.multi_reduction <maximumf>, %0, %cst_6 [2] : vector<1x16x384xf32> to vector<1x16xf32>
    %11 = vector.shape_cast %1 : vector<1x1x1xi32> to vector<1x1xi32>
    %12 = arith.sitofp %11 : vector<1x1xi32> to vector<1x1xf32>
    %cst_7 = arith.constant 1.000000e+00 : f32
    %13 = vector.broadcast %cst_7 : f32 to vector<1x1xf32>
    %14 = arith.maximumf %12, %13 : vector<1x1xf32>
    %15 = vector.broadcast %14 : vector<1x1xf32> to vector<1x16xf32>
    %16 = arith.divf %9, %15 : vector<1x16xf32>
    %17 = arith.addf %16, %10 : vector<1x16xf32>
    %c0_8 = arith.constant 0 : index
    %c0_9 = arith.constant 0 : index
    %18 = vector.load %arg3[%c0_8, %c0_9] : memref<16x16xf32, #tpu.memory_space<vmem>>, vector<16x16xf32>
    %cst_10 = arith.constant dense<0.000000e+00> : vector<1x16xf32>
    %19 = tpu.matmul %17, %18, %cst_10 {dimension_numbers = #tpu.dot_dimension_numbers<[1], [0], [0], [1], [0, 0, 1, 1], [], []>} : vector<1x16xf32>, vector<16x16xf32>, vector<1x16xf32> -> vector<1x16xf32>
    %20 = arith.negf %19 : vector<1x16xf32>
    %21 = math.exp %20 : vector<1x16xf32>
    %cst_11 = arith.constant 1.000000e+00 : f32
    %22 = vector.broadcast %cst_11 : f32 to vector<1x16xf32>
    %23 = arith.addf %22, %21 : vector<1x16xf32>
    %24 = arith.divf %22, %23 : vector<1x16xf32>
    %25 = vector.shape_cast %24 : vector<1x16xf32> to vector<1x16x1xf32>
    %26 = vector.broadcast %25 : vector<1x16x1xf32> to vector<1x16x384xf32>
    %27 = arith.mulf %0, %26 : vector<1x16x384xf32>
    %c0_12 = arith.constant 0 : index
    %c0_13 = arith.constant 0 : index
    %c0_14 = arith.constant 0 : index
    %28 = vector.load %arg4[%c0_12, %c0_13, %c0_14] : memref<1x16x384xf32, #tpu.memory_space<vmem>>, vector<1x16x384xf32>
    tpu.vector_store %arg4[%c0_12, %c0_13, %c0_14], %27 {strides = array<i32>} : memref<1x16x384xf32, #tpu.memory_space<vmem>>, vector<1x16x384xf32>,
    return
  }
  func.func @transform_0(%arg0: i32) -> (i32, i32, i32) {
    %c0_i32 = arith.constant 0 : i32
    %c0_i32_0 = arith.constant 0 : i32
    %c0_i32_1 = arith.constant 0 : i32
    return %arg0, %c0_i32, %c0_i32_0 : i32, i32, i32
  }
  func.func @transform_1(%arg0: i32) -> (i32, i32, i32) {
    %c0_i32 = arith.constant 0 : i32
    %c0_i32_0 = arith.constant 0 : i32
    %c0_i32_1 = arith.constant 0 : i32
    return %arg0, %c0_i32, %c0_i32_0 : i32, i32, i32
  }
  func.func @transform_2(%arg0: i32) -> (i32, i32) {
    %c0_i32 = arith.constant 0 : i32
    %c0_i32_0 = arith.constant 0 : i32
    %c0_i32_1 = arith.constant 0 : i32
    return %c0_i32, %c0_i32_0 : i32, i32
  }
  func.func @transform_3(%arg0: i32) -> (i32, i32, i32) {
    %c0_i32 = arith.constant 0 : i32
    %c0_i32_0 = arith.constant 0 : i32
    %c0_i32_1 = arith.constant 0 : i32
    return %arg0, %c0_i32, %c0_i32_0 : i32, i32, i32
  }
}

</mosaic_0001>

<bundles_post_ra>
// kernel: tpu_custom_call.1
= control target key start
LH: loop header
LB: loop body
LE: loop exit
PB: predicated region body
PF: predicated region fallthrough
CT: control target
= control target key end

     0   :  { %8 = vsyncpa [#allocation3], 0  ;;  %s1025_s0 = inlined_call_operand.hbm [shape: f32[2,16,384], index: 0, kind: input, shape index: {}]   ;;  %s1026_s1 = inlined_call_operand.vmem [shape: s32[2,1,1], index: 1, kind: input, shape index: {}]   ;;  %s1027_s2 = inlined_call_operand.hbm [shape: f32[16,16], index: 2, kind: input, shape index: {}]   ;;  %s1028_s3 = inlined_call_operand.hbm [shape: f32[2,16,384], index: 3, kind: output, shape index: {}]  }
   0x1   :  { %10 = vsyncpa [#allocation3 + $0x1], 0 }
   0x2   :  { %11 = vsyncpa [#allocation6], 0 }
   0x3   :  { %12 = vsyncpa [#allocation4], 0 }
   0x4   :  { %14 = vsyncpa [#allocation4 + $0x1], 0  ;;  %s772_s12 = smov 0   ;;  %s774_s13 = smov 0  }
   0x5   :  { %s776_s14 = smov 0   ;;  %s778_s15 = smov 0  }
   0x6 LB: > { %s793_s16 = sadd.s32 4294967295, %s737_s15   ;;  %s506_s17 = sadd.s32 4294967294, %s737_s15   ;;  %s737_s15 = sphi %s778_s15, %s1048_s15   ;;  %s733_s14 = sphi %s776_s14, %s1047_s14   ;;  %s729_s13 = sphi %s774_s13, %s1046_s13   ;;  %s725_s12 = sphi %s772_s12, %s1045_s12  }
   0x7   : > { %p40_p0 = scmp.ne.s32.totalorder %s729_s13, %s725_s12  ;;  %p1029_p1 = scmp.eq.s32.totalorder %s793_s16, 0 }
   0x8   : > { %p117_p3 = scmp.eq.s32.totalorder %s506_s17, 1  ;;  %p507_p5 = scmp.ge.s32.totalorder %s737_s15, 1 }
   0x9   : > { %p802_p4 = por %p1029_p1, %p40_p0  ;;  %p124_p7 = scmp.lt.s32.totalorder %s737_s15, 3 }
   0xa   : > { %p807_p6 = por %p117_p3, %p40_p0  ;;  %s739_s21 = smov [#allocation5]  }
   0xb   : > { %s1032_s18 = scalar_select %p802_p4, 1, 0 }
   0xc   : > { %s1033_s19 = scalar_select %p807_p6, 1, 0 }
   0xd   : > { %p812_p8 = pnand %p507_p5, %p124_p7  ;;  %s136_s22 = sshll.u32 %s739_s21, 4  ;;  %s816_s22 = int_to_ptr.vmem [resolvable:$true] %s136_s22 }
   0xe   : > { %s828_s24 = sadd.s32 1, %s737_s15   ;;  %s27_s25 = sadd.s32 1, %s733_s14 }
   0xf   : > { %s1034_s20 = scalar_select %p812_p8, 1, 0 }
  0x10   : > { %p543_p9 = pneg %p812_p8  ;;  %s24_s26 = ssub.s32 %s737_s15, %s828_s24 }
  0x11   : > { %s609_s29 = scalar_lea.hbm %s1027_s2, 256 }
  0x12   : > { %p823_p11 = pnand %p543_p9, %p1029_p1  ;;  %p610_p12 = scmp.ne.s32.totalorder %s1027_s2, %s609_s29 }
  0x13   : > { %p616_p5 = scmp.lt.u32.totalorder %s609_s29, %s1027_s2 }
  0x14   : > { %p611_p13 = pneg %p823_p11 }
  0x16   : > { %p612_p0 = pnand %p611_p13, %p610_p12 }
  0x18   : > { %p613_p3 = pneg %p612_p0 }
  0x1a   : > { %p618_p7 = pnand %p616_p5, %p613_p3 }
  0x1c   : > { %621 = shalt.err (!%p618_p7)
}
  0x1d   : > { %s622_s7 = scalar_lea.vmem %s816_s22, 256  ;;  %p630_p2 = scmp.lt.s32.totalorder %s816_s22, %s816_s22 }
  0x1e   : > { %p623_p9 = scmp.ne.s32.totalorder %s816_s22, %s622_s7  ;;  %p631_p6 = scmp.lt.s32.totalorder %s622_s7, %s622_s7 }
  0x20   : > { %p625_p10 = pnand %p623_p9, %p611_p13  ;;  %p632_p4 = por %p631_p6, %p630_p2 }
  0x22   : > { %p626_p1 = pneg %p625_p10 }
  0x24   : > { %p633_p8 = pnand %p632_p4, %p626_p1 }
  0x26   : > { %636 = shalt.err (!%p633_p8)
}
  0x27   : > { %s740_s8 = smov 128   ;;  %s741_s9 = smov 8  }
  0x28   : > { %546 = dma.hbm_to_vmem [thread:$0]  (!%p823_p11), %s1027_s2, 256, %s816_s22, [#allocation6], %s740_s8, %s740_s8, %s741_s9  }
  0x29   : > { %p25_p2 = scmp.eq.s32.totalorder %s24_s26, 0  ;;  %p34_p1 = scmp.ne.s32.totalorder %s733_s14, %s729_s13 }
  0x2a   : > { %p35_p4 = scmp.eq.s32.totalorder %s737_s15, 0  ;;  %p556_p6 = scmp.lt.s32.totalorder %s737_s15, 2 }
  0x2b   : > { %s859_s17 = scalar_select %p25_p2, %s733_s14, %s27_s25  }
  0x2c   : > { %p36_p8 = por %p35_p4, %p34_p1  ;;  %p1036_p10 = scmp.eq.s32.totalorder %s793_s16, 1 }
  0x2d   : > { %s150_s27 = sand.u32 1, %s733_s14   ;;  %s532_s28 = smul.u32 768, %s737_s15 }
  0x2e   : > { %p863_p12 = por %p1036_p10, %p34_p1  ;;  %s531_s29 = smul.u32 48, %s150_s27 }
  0x2f   : > { %s872_s4 = scalar_lea.hbm %s1025_s0, %s532_s28  ;;  %p874_p11 = pnand %p556_p6, %p36_p8 }
  0x30   : > { %s154_s25 = scalar_lea.vmem [#allocation2], %s531_s29  ;;  %s880_s5 = scalar_lea.sflag [#allocation3], %s150_s27 }
  0x31   : > { %s161_s26 = sshll.u32 %s154_s25, 4  ;;  %s637_s6 = scalar_lea.hbm %s872_s4, 768  ;;  %s878_s26 = int_to_ptr.vmem [resolvable:$true] %s161_s26 }
  0x32   : > { %p638_p13 = scmp.ne.s32.totalorder %s872_s4, %s637_s6  ;;  %p639_p0 = pneg %p874_p11 }
  0x33   : > { %s642_s9 = scalar_lea.hbm %s1025_s0, 1536  ;;  %p643_p7 = scmp.lt.u32.totalorder %s872_s4, %s1025_s0 }
  0x34   : > { %p640_p3 = pnand %p639_p0, %p638_p13  ;;  %p644_p9 = scmp.lt.u32.totalorder %s642_s9, %s637_s6 }
  0x35   : > { %p646_p1 = scmp.lt.u32.totalorder %s637_s6, %s872_s4 }
  0x36   : > { %p641_p5 = pneg %p640_p3  ;;  %p645_p2 = por %p644_p9, %p643_p7 }
  0x38   : > { %p647_p4 = por %p646_p1, %p645_p2 }
  0x3a   : > { %p648_p6 = pnand %p647_p4, %p641_p5 }
  0x3c   : > { %651 = shalt.err (!%p648_p6)
}
  0x3d   : > { %s652_s27 = scalar_lea.vmem %s878_s26, 768  ;;  %s742_s28 = smov [#allocation2]  }
  0x3e   : > { %p653_p8 = scmp.ne.s32.totalorder %s878_s26, %s652_s27  ;;  %s657_s29 = sshll.u32 %s742_s28, 4  ;;  %s658_s29 = int_to_ptr.vmem [resolvable:$false] %s657_s29 }
  0x3f   : > { %s659_s23 = scalar_lea.vmem %s658_s29, 1536  ;;  %p660_p3 = scmp.lt.s32.totalorder %s878_s26, %s658_s29 }
  0x40   : > { %p655_p10 = pnand %p653_p8, %p639_p0  ;;  %p661_p7 = scmp.lt.s32.totalorder %s659_s23, %s652_s27 }
  0x42   : > { %p656_p13 = pneg %p655_p10  ;;  %p662_p9 = por %p661_p7, %p660_p3 }
  0x44   : > { %p663_p2 = pnand %p662_p9, %p656_p13 }
  0x46   : > { %666 = shalt.err (!%p663_p2)
}
  0x47   : > { %s743_s30 = smov 384   ;;  %s744_s25 = smov 24  }
  0x48   : > { %550 = dma.hbm_to_vmem [thread:$0]  (!%p874_p11), %s872_s4, 768, %s878_s26, %s880_s5, %s743_s30, %s743_s30, %s744_s25  }
  0x49   : > { %p1039_p0 = scmp.ne.s32.totalorder %s1034_s20, 0 }
  0x4a   : > { %s911_s6 = sand.u32 (!%p1039_p0), 1, %s729_s13   ;;  %p1040_p5 = scmp.ne.s32.totalorder (!%p1039_p0), %s1032_s18, 0 }
  0x4b   : > { %179 = sbr.rel (%p1039_p0) target bundleno = 760 (0x2f8), region = 32  ;;  %s182_s8 = scalar_lea.sflag (!%p1039_p0), [#allocation3], %s911_s6 }
  0x4c   : > { %s533_s7 = smul.u32 (!%p1039_p0), 48, %s911_s6 }
  0x4e   : > { %s917_s9 = scalar_lea.vmem (!%p1039_p0), [#allocation2], %s533_s7 }
  0x52   : > { %712 = dma.done.wait (%p1040_p5), %s182_s8, 768  }
  0x53   : > { %714 = vsyncadd (%p1040_p5), %s182_s8, 4294966528  ;;  %p1041_p11 = scmp.eq.s32.totalorder %s793_s16, 0 }
  0x55   : > { %716 = dma.done.wait (%p1041_p11), [#allocation6], 256   ;;  %p1042_p1 = pmov %p1041_p11 }
  0x56   : > { %p215_p4 = scmp.lt.s32.totalorder %s793_s16, 1  ;;  %v745_v0 = vmov 0   ;;  %v933_v4 = vld [vmem:[%s917_s9] sm:$0xff]  ;;  %v936_v5 = vld [vmem:[%s917_s9 + $0x10] sm:$0xff]  ;;  %v941_v7 = vld [vmem:[%s917_s9 + $0x8] sm:$0xff]  ;;  %v225_v9 = vlaneseq  ;;  %v746_v35 = vmov 0.0|0.0  }
  0x57   : > { %718 = vsyncadd (%p1042_p1), [#allocation6], 4294967040  ;;  %602 = vset.pattern.permute.xlu0 %v745_v0  ;;  %v259_v6 = vmax.f32 %v933_v4, %v936_v5  ;;  %v948_v17 = vld [vmem:[%s917_s9 + $0x18] sm:$0xff]  ;;  %v951_v18 = vld [vmem:[%s917_s9 + $0x20] sm:$0xff]  ;;  %528 = vmatprep.subr.bf16.mxu0 %v746_v35  ;;  %vm747_vm3 = vmmov 0   ;;  %v748_v36 = vmov 0.0  }
  0x58   : > { %s216_s20 = scalar_select %p215_p4, %s793_s16, 1  ;;  %v233_v10 = vshrl.u32 %v225_v9, 7  ;;  %v226_v11 = vand.u32 127, %v225_v9  ;;  %v959_v26 = vld [vmem:[%s917_s9 + $0x28] sm:$0xff]  ;;  %v283_v32 = vld [vmem:[#allocation5] sm:$0xff]  ;;  %525 = vmatprep.mubr.msk.f32.mxu0 %vm747_vm3, %v748_v36  ;;  %vm296_vm4 = vcmask 130112  }
  0x59   : > { %v260_v8 = vmax.f32 %v259_v6, %v941_v7  ;;  %v263_v28 = vmax.f32 %v948_v17, %v959_v26  ;;  %v284_v33 = vld [vmem:[#allocation5 + $0x8] sm:$0xff]  ;;  %vm298_vm5 = vcmask 130048   ;;  %s214_s26 = scalar_lea.vmem [#allocation7], %s533_s7  ;;  %s534_s10 = smul.u32 768, %s793_s16 }
  0x5a   : > { %s217_s18 = scalar_lea.vmem %s1026_s1, %s216_s20  ;;  %v944_v12 = vsub.s32 0, %v233_v10  ;;  %v227_v13 = vadd.s32 128, %v226_v11  ;;  %v228_v14 = vadd.s32 256, %v226_v11  ;;  %v529_v34 = vpack.c.bf16 %v284_v33, %v283_v32  ;;  %s414_s5 = sshll.u32 %s214_s26, 4  ;;  %s973_s5 = int_to_ptr.vmem [resolvable:$true] %s414_s5 }
  0x5b   : > { %v224_v1 = vld [vmem:[%s217_s18] sm:$0x1]  ;;  %v264_v31 = vmax.f32 %v263_v28, %v951_v18  ;;  %v291_v42 = vadd.s32 4294967288, %v226_v11  ;;  %v289_v45 = vsub.s32 %v226_v11, %v233_v10  ;;  %s981_s16 = scalar_lea.hbm %s1028_s3, %s534_s10  ;;  %s401_s28 = scalar_lea.sflag [#allocation4], %s911_s6 }
  0x5c   : > { %230 = vperm.xlu0 %602, %v224_v1   ;;  %v267_v2 = vcvt.s32.f32 %v224_v1  ;;  %530 = vmatpush3.bf16.msra.mxu0 %v529_v34  ;;  %s667_s29 = scalar_lea.vmem %s973_s5, 768  ;;  %s749_s23 = smov [#allocation7]  }
  0x5d   : > { %v294_v48 = vsub.s32 %v291_v42, %v233_v10  ;;  %p668_p6 = scmp.ne.s32.totalorder %s973_s5, %s667_s29  ;;  %s671_s30 = sshll.u32 %s749_s23, 4  ;;  %s672_s30 = int_to_ptr.vmem [resolvable:$false] %s671_s30 }
  0x5e   : > { %v268_v3 = vmax.f32 %v267_v2, 1.0  ;;  %s673_s25 = scalar_lea.vmem %s672_s30, 1536  ;;  %p674_p13 = scmp.lt.s32.totalorder %s973_s5, %s672_s30 }
  0x5f   : > { %p669_p8 = pnand %p668_p6, %p863_p12  ;;  %p675_p3 = scmp.lt.s32.totalorder %s673_s25, %s667_s29 }
  0x60   : > { %271 = vperm.xlu0 %602, %v268_v3  }
  0x61   : > { %p670_p10 = pneg %p669_p8  ;;  %p676_p7 = por %p675_p3, %p674_p13 }
  0x63   : > { %p677_p9 = pnand %p676_p7, %p670_p10 }
  0x7f   : > { %261 = vmax.xlane.f32.xlu0 %v260_v8 }
  0xdb   : > { %v231_v15 = vpop.permute.xlu0 %230 }
  0xdc   : > { %v235_v16 = vrot.slane %v231_v15, %v944_v12 }
  0xde   : > { %vm236_vm0 = vcmp.lt.s32.totalorder %v226_v11, %v235_v16  ;;  %vm237_vm1 = vcmp.lt.s32.totalorder %v227_v13, %v235_v16  ;;  %vm238_vm2 = vcmp.lt.s32.totalorder %v228_v14, %v235_v16 }
  0xdf   : > { %v245_v19 = vsel %vm236_vm0, %v933_v4, 0.0  ;;  %v246_v20 = vsel %vm237_vm1, %v941_v7, 0.0  ;;  %v248_v21 = vsel %vm236_vm0, %v948_v17, 0.0  ;;  %v249_v23 = vsel %vm237_vm1, %v951_v18, 0.0  ;;  %v272_v37 = vpop.permute.xlu0 %271 }
  0xe0   : > { %v251_v22 = vadd.f32 %v246_v20, %v245_v19  ;;  %v247_v24 = vsel %vm238_vm2, %v936_v5, 0.0  ;;  %v255_v27 = vadd.f32 %v249_v23, %v248_v21  ;;  %v250_v29 = vsel %vm238_vm2, %v959_v26, 0.0 }
  0xe1   : > { %v277_v38 = vrot.slane %v272_v37, %v944_v12 }
  0xe2   : > { %v252_v25 = vadd.f32 %v251_v22, %v247_v24  ;;  %v256_v30 = vadd.f32 %v255_v27, %v250_v29 }
  0xe3   : > { %603 = vrcp.f32 %v277_v38 }
  0xe4   : > { %253 = vadd.xlane.f32.xlu1 %v252_v25 }
  0xe8   : > { %257 = vadd.xlane.f32.xlu1 %v256_v30 }
  0xec   : > { %265 = vmax.xlane.f32.xlu1 %v264_v31 }
  0xed   : > { %v604_v40 = vpop.eup %603 }
 0x10c   : > { %v262_v43 = vpop.xlane.xlu0 %261 }
 0x171   : > { %v254_v39 = vpop.xlane.xlu1 %253 }
 0x172   : > { %v279_v41 = vmul.f32 %v604_v40, %v254_v39 }
 0x174   : > { %v281_v46 = vadd.f32 %v279_v41, %v262_v43 }
 0x175   : > { %v258_v44 = vpop.xlane.xlu1 %257 }
 0x176   : > { %v280_v47 = vmul.f32 %v604_v40, %v258_v44  ;;  %v290_v51 = vrot.slane %v281_v46, %v289_v45 }
 0x179   : > { %v266_v49 = vpop.xlane.xlu1 %265 }
 0x17a   : > { %v282_v50 = vadd.f32 %v280_v47, %v266_v49 }
 0x17c   : > { %v295_v52 = vrot.slane %v282_v50, %v294_v48 }
 0x17e   : > { %v297_v53 = vsel %vm296_vm4, %v295_v52, %v290_v51 }
 0x17f   : > { %526 = vmatmul.mubr.msk.f32.vlgmr.msra.gmra.mrb[0].mxu0 %vm298_vm5, %v297_v53 }
 0x252   : > { %v367_v54 = vpop.f32.mrb[0].mxu0 }
 0x253   : > { %v514_v55 = vmul.f32 -1.442695, %v367_v54  ;;  %v527_v56 = vpop.f32.mrb[1].mxu0 }
 0x255   : > { %605 = vpow2.f32 %v514_v55 }
 0x25f   : > { %v606_v57 = vpop.eup %605 }
 0x260   : > { %v374_v58 = vadd.f32 1.0, %v606_v57 }
 0x262   : > { %607 = vrcp.f32 %v374_v58 }
 0x26c   : > { %v608_v59 = vpop.eup %607 }
 0x26d   : > { %v380_v60 = vrot.slane %v608_v59, %v944_v12 }
 0x26f   : > { %382 = vbcast.lane.b32.xlu1 %v380_v60, 256 }
 0x273   : > { %386 = vbcast.lane.b32.xlu1 %v380_v60, 264 }
 0x2e1   : > { %v383_v61 = vpop.permute.xlu1 %382 }
 0x2e2   : > { %v388_v62 = vmul.f32 %v383_v61, %v933_v4  ;;  %v389_v63 = vmul.f32 %v383_v61, %v941_v7  ;;  %v390_v0 = vmul.f32 %v383_v61, %v936_v5 }
 0x2e4   : > { %394 = vst [vmem:[%s214_s26] sm:$0xff] %v388_v62  ;;  %395 = vst [vmem:[%s214_s26 + $0x8] sm:$0xff] %v389_v63 }
 0x2e5   : > { %396 = vst [vmem:[%s214_s26 + $0x10] sm:$0xff] %v390_v0  ;;  %v387_v1 = vpop.permute.xlu1 %386 }
 0x2e6   : > { %v391_v2 = vmul.f32 %v387_v1, %v948_v17  ;;  %v392_v3 = vmul.f32 %v387_v1, %v951_v18  ;;  %v393_v4 = vmul.f32 %v387_v1, %v959_v26 }
 0x2e8   : > { %397 = vst [vmem:[%s214_s26 + $0x18] sm:$0xff] %v391_v2  ;;  %398 = vst [vmem:[%s214_s26 + $0x20] sm:$0xff] %v392_v3 }
 0x2e9   : > { %399 = vst [vmem:[%s214_s26 + $0x28] sm:$0xff] %v393_v4 }
 0x2ea   : > { %680 = shalt.err (!%p677_p9)
}
 0x2eb   : > { %s681_s7 = scalar_lea.hbm %s981_s16, 768  ;;  %s685_s20 = scalar_lea.hbm %s1028_s3, 1536 }
 0x2ec   : > { %p682_p2 = scmp.ne.s32.totalorder %s981_s16, %s681_s7  ;;  %p686_p11 = scmp.lt.u32.totalorder %s981_s16, %s1028_s3 }
 0x2ed   : > { %p687_p1 = scmp.lt.u32.totalorder %s685_s20, %s681_s7  ;;  %p689_p6 = scmp.lt.u32.totalorder %s681_s7, %s981_s16 }
 0x2ee   : > { %p683_p0 = pnand %p682_p2, %p863_p12 }
 0x2ef   : > { %p688_p4 = por %p687_p1, %p686_p11 }
 0x2f0   : > { %p684_p5 = pneg %p683_p0 }
 0x2f1   : > { %p690_p8 = por %p689_p6, %p688_p4 }
 0x2f3   : > { %p691_p10 = pnand %p690_p8, %p684_p5 }
 0x2f5   : > { %694 = shalt.err (!%p691_p10)
}
 0x2f6   : > { %s750_s18 = smov 384   ;;  %s751_s26 = smov 24  }
 0x2f7   : > { %541 = dma.vmem_to_hbm [thread:$0]  (%p863_p12), %s973_s5, 768, %s981_s16, %s401_s28, %s750_s18, %s750_s18, %s751_s26  }
 0x2f8 PF: > { %s429_s10 = sand.u32 1, %s725_s12   ;;  %p1043_p13 = scmp.ne.s32.totalorder %s1033_s19, 0 }
 0x2f9   : > { %p1044_p3 = scmp.ge.s32.totalorder %s737_s15, 2  ;;  %s430_s11 = scalar_lea.sflag [#allocation4], %s429_s10 }
 0x2fb   : > { %p552_p7 = pnand %p1044_p3, %p1043_p13 }
 0x2fd   : > { %720 = dma.done.wait (!%p552_p7), %s430_s11, 768  }
 0x2fe   : > { %722 = vsyncadd (!%p552_p7), %s430_s11, 4294966528  ;;  %p17_p9 = scmp.ge.s32.totalorder %s828_s24, 4   ;;  %s1045_s12 = smov %s729_s13 }
 0x2ff   : > { %s1046_s13 = smov %s733_s14  ;;  %s1047_s14 = smov %s859_s17 }
 0x300   : > { %s1048_s15 = smov %s828_s24  ;;  %19 = sbr.rel (!%p17_p9) target bundleno = 6 (0x6), region = 84 }
 0x307   :  { %435 = vsyncpa [#allocation3], 1 }
 0x308   :  { %437 = vsyncpa [#allocation3 + $0x1], 1 }
 0x309   :  { %438 = vsyncpa [#allocation6], 1 }
 0x30a   :  { %439 = vsyncpa [#allocation4], 1 }
 0x30b   :  { %441 = vsyncpa [#allocation4 + $0x1], 1 }

</bundles_post_ra>
